<compile_context>
chip_gen: v7x
topology: tpu7x:2x2x1
jax: 0.10.0
libtpu: 0.0.40
codegen_flags: <defaults>
</compile_context>

<pallas_src>
import jax
import jax.numpy as jnp
from jax.experimental import pallas as pl
from jax.experimental.pallas import tpu as pltpu


# --------------------------------------------------------------------------- #
# Kernel
# --------------------------------------------------------------------------- #
def impala_kernel(x_ref, w1_ref, b1_ref, w2_ref, b2_ref,
                  wpi_ref, bpi_ref, wv_ref, bv_ref,
                  pi_ref, v_ref):
    # Cast the f32 input tile to the MXU operand dtype on the VPU (hidden under
    # the DMA / MXU; avoids a separate wrapper-side cast pass over HBM).
    x = x_ref[...].astype(w1_ref.dtype)

    # fc1 + ReLU  (bf16 x bf16 -> f32 accumulate on the MXU)
    h1 = jnp.dot(x, w1_ref[...], preferred_element_type=jnp.float32)
    h1 = jnp.maximum(h1 + b1_ref[...], 0.0)

    # fc2 + ReLU
    h2 = jnp.dot(h1.astype(w2_ref.dtype), w2_ref[...],
                 preferred_element_type=jnp.float32)
    h2 = jnp.maximum(h2 + b2_ref[...], 0.0)
    h2c = h2.astype(wpi_ref.dtype)

    # Policy head (narrow, full-extent last dim -> tiny output write)
    pi_ref[...] = (jnp.dot(h2c, wpi_ref[...], preferred_element_type=jnp.float32)
                   + bpi_ref[...]).astype(pi_ref.dtype)
    # Value head
    v_ref[...] = (jnp.dot(h2c, wv_ref[...], preferred_element_type=jnp.float32)
                  + bv_ref[...]).astype(v_ref.dtype)


# --------------------------------------------------------------------------- #
# One-time parameter preparation (hoisted out of the hot path)
# --------------------------------------------------------------------------- #
def prepare_params(params, *, use_bf16=True):
    """Cast weights to the MXU operand dtype once; keep biases in f32."""
    w1, b1, w2, b2, wpi, bpi, wv, bv = params
    cdt = jnp.bfloat16 if use_bf16 else jnp.float32
    return (w1.astype(cdt), b1.astype(jnp.float32),
            w2.astype(cdt), b2.astype(jnp.float32),
            wpi.astype(cdt), bpi.astype(jnp.float32),
            wv.astype(cdt), bv.astype(jnp.float32))


def detect_num_tensorcores():
    """Best-effort TensorCore count (v7x has 2 per chip). Falls back to 1."""
    try:
        info = pltpu.get_tpu_info()
        for attr in ("num_cores", "tensor_cores_per_chip",
                     "num_tensorcores", "cores_per_chip"):
            v = getattr(info, attr, None)
            if isinstance(v, int) and v > 0:
                return v
    except Exception:
        pass
    return 1


def _round_up(n, m):
    return ((n + m - 1) // m) * m


# --------------------------------------------------------------------------- #
# Forward wrapper
# --------------------------------------------------------------------------- #
def impala_forward(x, prepared_params, *, batch_tile=1024, num_tensorcores=1):
    B, d_states = x.shape
    (w1_c, b1_c, w2_c, b2_c, wpi_c, bpi_c, wv_c, bv_c) = prepared_params
    n_actions = wpi_c.shape[1]

    # ---- batch tile selection -------------------------------------------- #
    # Single grid step when the whole batch fits in one tile (no artificial
    # splitting on 1-TC chips).  Only split for multi-TC chips when each core
    # gets enough rows to amortize the per-step overhead.
    bt = min(_round_up(batch_tile, 16), _round_up(B, 16))
    if num_tensorcores > 1 and B >= 256 * num_tensorcores:
        per_core = _round_up(pl.cdiv(B, num_tensorcores), 16)
        bt = min(bt, per_core)
    bt = max(16, bt)

    B_pad = _round_up(B, bt)
    x_in = x if B_pad == B else jnp.pad(x, ((0, B_pad - B), (0, 0)))
    grid = (B_pad // bt,)

    def resident(arr):
        # constant block index -> stays resident in VMEM across the grid
        return pl.BlockSpec(arr.shape, lambda i: (0, 0))

    in_specs = [
        pl.BlockSpec((bt, d_states), lambda i: (i, 0)),   # x tile (f32)
        resident(w1_c), resident(b1_c),
        resident(w2_c), resident(b2_c),
        resident(wpi_c), resident(bpi_c),
        resident(wv_c), resident(bv_c),
    ]
    out_specs = (
        pl.BlockSpec((bt, n_actions), lambda i: (i, 0)),  # pi logits
        pl.BlockSpec((bt, 1), lambda i: (i, 0)),          # value
    )
    out_shape = (
        jax.ShapeDtypeStruct((B_pad, n_actions), jnp.float32),
        jax.ShapeDtypeStruct((B_pad, 1), jnp.float32),
    )

    pi_logits, v_theta = pl.pallas_call(
        impala_kernel,
        grid=grid,
        in_specs=in_specs,
        out_specs=out_specs,
        out_shape=out_shape,
        compiler_params=pltpu.CompilerParams(
            dimension_semantics=("parallel",)),
    )(x_in, w1_c, b1_c, w2_c, b2_c, wpi_c, bpi_c, wv_c, bv_c)

    if B_pad != B:
        pi_logits = pi_logits[:B]
        v_theta = v_theta[:B]
    return pi_logits, v_theta


# --------------------------------------------------------------------------- #
# Parameter init + pure-JAX reference
# --------------------------------------------------------------------------- #
def init_params(key, d_states, n_actions):
    """Deterministic init mirroring nn.Linear shapes (stored as [in, out])."""
    def linear(k, fan_in, fan_out):
        kw, kb = jax.random.split(k)
        bound = 1.0 / jnp.sqrt(jnp.float32(fan_in))
        w = jax.random.uniform(kw, (fan_in, fan_out), jnp.float32, -bound, bound)
        b = jax.random.uniform(kb, (1, fan_out), jnp.float32, -bound, bound)
        return w, b

    k1, k2, k3, k4 = jax.random.split(key, 4)
    w1, b1 = linear(k1, d_states, 128)
    w2, b2 = linear(k2, 128, 64)
    wpi, bpi = linear(k3, 64, n_actions)
    wv, bv = linear(k4, 64, 1)
    return (w1, b1, w2, b2, wpi, bpi, wv, bv)


def impala_reference(x, params, *, use_bf16=True):
    """Pure-JAX reference matching the kernel's compute path (bf16 MXU operands,
    f32 accumulation / elementwise)."""
    w1, b1, w2, b2, wpi, bpi, wv, bv = params
    cdt = jnp.bfloat16 if use_bf16 else jnp.float32

    def lin(a, w, b):
        return jnp.dot(a.astype(cdt), w.astype(cdt),
                       preferred_element_type=jnp.float32) + b

    h1 = jnp.maximum(lin(x, w1, b1), 0.0)
    h2 = jnp.maximum(lin(h1, w2, b2), 0.0)
    return lin(h2, wpi, bpi), lin(h2, wv, bv)


# --------------------------------------------------------------------------- #
# Demo / correctness check
# --------------------------------------------------------------------------- #
if __name__ == "__main__":
    key = jax.random.PRNGKey(0)
    k_param, k_x = jax.random.split(key)

    B, d_states, n_actions = 64, 32, 4
    params = init_params(k_param, d_states, n_actions)
    prepped = prepare_params(params, use_bf16=True)       # one-time prep
    x = jax.random.normal(k_x, (B, d_states), jnp.float32)

    ntc = detect_num_tensorcores()
    fwd = jax.jit(lambda xx: impala_forward(xx, prepped, num_tensorcores=ntc))

    pi_logits, v_theta = fwd(x)
    pi_logits = jax.block_until_ready(pi_logits)
    v_theta = jax.block_until_ready(v_theta)

    pi_ref, v_ref = impala_reference(x, params, use_bf16=True)
    assert pi_logits.shape == (B, n_actions)
    assert v_theta.shape == (B, 1)
    assert jnp.allclose(pi_logits, pi_ref, atol=1e-3, rtol=1e-3)
    assert jnp.allclose(v_theta, v_ref, atol=1e-3, rtol=1e-3)

    print("KERNEL_OK")
</pallas_src>

<mosaic_0001>
module attributes {stable_mosaic.version = 11 : i64} {
  func.func @impala_kernel(%arg0: i32, %arg1: memref<64x32xf32, #tpu.memory_space<vmem>>, %arg2: memref<32x128xbf16, #tpu.memory_space<vmem>>, %arg3: memref<1x128xf32, #tpu.memory_space<vmem>>, %arg4: memref<128x64xbf16, #tpu.memory_space<vmem>>, %arg5: memref<1x64xf32, #tpu.memory_space<vmem>>, %arg6: memref<64x4xbf16, #tpu.memory_space<vmem>>, %arg7: memref<1x4xf32, #tpu.memory_space<vmem>>, %arg8: memref<64x1xbf16, #tpu.memory_space<vmem>>, %arg9: memref<1x1xf32, #tpu.memory_space<vmem>>, %arg10: memref<64x4xf32, #tpu.memory_space<vmem>>, %arg11: memref<64x1xf32, #tpu.memory_space<vmem>>) attributes {dimension_semantics = [#tpu.dimension_semantics<parallel>], iteration_bounds = array<i64: 1>, scalar_prefetch = 0 : i64, scratch_operands = 0 : i64, tpu.core_type = #tpu.core_type<tc>, window_params = [{transform_indices = @transform_0, window_bounds = array<i64: 64, 32>}, {pipeline_mode = #tpu.pipeline_mode<synchronous>, transform_indices = @transform_1, window_bounds = array<i64: 32, 128>}, {pipeline_mode = #tpu.pipeline_mode<synchronous>, transform_indices = @transform_2, window_bounds = array<i64: 1, 128>}, {pipeline_mode = #tpu.pipeline_mode<synchronous>, transform_indices = @transform_3, window_bounds = array<i64: 128, 64>}, {pipeline_mode = #tpu.pipeline_mode<synchronous>, transform_indices = @transform_4, window_bounds = array<i64: 1, 64>}, {pipeline_mode = #tpu.pipeline_mode<synchronous>, transform_indices = @transform_5, window_bounds = array<i64: 64, 4>}, {pipeline_mode = #tpu.pipeline_mode<synchronous>, transform_indices = @transform_6, window_bounds = array<i64: 1, 4>}, {pipeline_mode = #tpu.pipeline_mode<synchronous>, transform_indices = @transform_7, window_bounds = array<i64: 64, 1>}, {pipeline_mode = #tpu.pipeline_mode<synchronous>, transform_indices = @transform_8, window_bounds = array<i64: 1, 1>}, {transform_indices = @transform_9, window_bounds = array<i64: 64, 4>}, {transform_indices = @transform_10, window_bounds = array<i64: 64, 1>}]} {
    %c0 = arith.constant 0 : index
    %c0_0 = arith.constant 0 : index
    %0 = vector.load %arg1[%c0, %c0_0] : memref<64x32xf32, #tpu.memory_space<vmem>>, vector<64x32xf32>
    %1 = arith.truncf %0 : vector<64x32xf32> to vector<64x32xbf16>
    %c0_1 = arith.constant 0 : index
    %c0_2 = arith.constant 0 : index
    %2 = vector.load %arg2[%c0_1, %c0_2] : memref<32x128xbf16, #tpu.memory_space<vmem>>, vector<32x128xbf16>
    %cst = arith.constant dense<0.000000e+00> : vector<64x128xf32>
    %3 = tpu.matmul %1, %2, %cst {dimension_numbers = #tpu.dot_dimension_numbers<[1], [0], [0], [1], [0, 0, 1, 1], [], []>} : vector<64x32xbf16>, vector<32x128xbf16>, vector<64x128xf32> -> vector<64x128xf32>
    %c0_3 = arith.constant 0 : index
    %c0_4 = arith.constant 0 : index
    %4 = vector.load %arg3[%c0_3, %c0_4] : memref<1x128xf32, #tpu.memory_space<vmem>>, vector<1x128xf32>
    %5 = vector.broadcast %4 : vector<1x128xf32> to vector<64x128xf32>
    %6 = arith.addf %3, %5 : vector<64x128xf32>
    %cst_5 = arith.constant 0.000000e+00 : f32
    %7 = vector.broadcast %cst_5 : f32 to vector<64x128xf32>
    %8 = arith.maximumf %6, %7 : vector<64x128xf32>
    %9 = arith.truncf %8 : vector<64x128xf32> to vector<64x128xbf16>
    %c0_6 = arith.constant 0 : index
    %c0_7 = arith.constant 0 : index
    %10 = vector.load %arg4[%c0_6, %c0_7] : memref<128x64xbf16, #tpu.memory_space<vmem>>, vector<128x64xbf16>
    %cst_8 = arith.constant dense<0.000000e+00> : vector<64x64xf32>
    %11 = tpu.matmul %9, %10, %cst_8 {dimension_numbers = #tpu.dot_dimension_numbers<[1], [0], [0], [1], [0, 0, 1, 1], [], []>} : vector<64x128xbf16>, vector<128x64xbf16>, vector<64x64xf32> -> vector<64x64xf32>
    %c0_9 = arith.constant 0 : index
    %c0_10 = arith.constant 0 : index
    %12 = vector.load %arg5[%c0_9, %c0_10] : memref<1x64xf32, #tpu.memory_space<vmem>>, vector<1x64xf32>
    %13 = vector.broadcast %12 : vector<1x64xf32> to vector<64x64xf32>
    %14 = arith.addf %11, %13 : vector<64x64xf32>
    %cst_11 = arith.constant 0.000000e+00 : f32
    %15 = vector.broadcast %cst_11 : f32 to vector<64x64xf32>
    %16 = arith.maximumf %14, %15 : vector<64x64xf32>
    %17 = arith.truncf %16 : vector<64x64xf32> to vector<64x64xbf16>
    %c0_12 = arith.constant 0 : index
    %c0_13 = arith.constant 0 : index
    %18 = vector.load %arg6[%c0_12, %c0_13] : memref<64x4xbf16, #tpu.memory_space<vmem>>, vector<64x4xbf16>
    %cst_14 = arith.constant dense<0.000000e+00> : vector<64x4xf32>
    %19 = tpu.matmul %17, %18, %cst_14 {dimension_numbers = #tpu.dot_dimension_numbers<[1], [0], [0], [1], [0, 0, 1, 1], [], []>} : vector<64x64xbf16>, vector<64x4xbf16>, vector<64x4xf32> -> vector<64x4xf32>
    %c0_15 = arith.constant 0 : index
    %c0_16 = arith.constant 0 : index
    %20 = vector.load %arg7[%c0_15, %c0_16] : memref<1x4xf32, #tpu.memory_space<vmem>>, vector<1x4xf32>
    %21 = vector.broadcast %20 : vector<1x4xf32> to vector<64x4xf32>
    %22 = arith.addf %19, %21 : vector<64x4xf32>
    %c0_17 = arith.constant 0 : index
    %c0_18 = arith.constant 0 : index
    %23 = vector.load %arg10[%c0_17, %c0_18] : memref<64x4xf32, #tpu.memory_space<vmem>>, vector<64x4xf32>
    tpu.vector_store %arg10[%c0_17, %c0_18], %22 {strides = array<i32>} : memref<64x4xf32, #tpu.memory_space<vmem>>, vector<64x4xf32>,
    %c0_19 = arith.constant 0 : index
    %c0_20 = arith.constant 0 : index
    %24 = vector.load %arg8[%c0_19, %c0_20] : memref<64x1xbf16, #tpu.memory_space<vmem>>, vector<64x1xbf16>
    %cst_21 = arith.constant dense<0.000000e+00> : vector<64x1xf32>
    %25 = tpu.matmul %17, %24, %cst_21 {dimension_numbers = #tpu.dot_dimension_numbers<[1], [0], [0], [1], [0, 0, 1, 1], [], []>} : vector<64x64xbf16>, vector<64x1xbf16>, vector<64x1xf32> -> vector<64x1xf32>
    %c0_22 = arith.constant 0 : index
    %c0_23 = arith.constant 0 : index
    %26 = vector.load %arg9[%c0_22, %c0_23] : memref<1x1xf32, #tpu.memory_space<vmem>>, vector<1x1xf32>
    %27 = vector.broadcast %26 : vector<1x1xf32> to vector<64x1xf32>
    %28 = arith.addf %25, %27 : vector<64x1xf32>
    %c0_24 = arith.constant 0 : index
    %c0_25 = arith.constant 0 : index
    %29 = vector.load %arg11[%c0_24, %c0_25] : memref<64x1xf32, #tpu.memory_space<vmem>>, vector<64x1xf32>
    tpu.vector_store %arg11[%c0_24, %c0_25], %28 {strides = array<i32>} : memref<64x1xf32, #tpu.memory_space<vmem>>, vector<64x1xf32>,
    return
  }
  func.func @transform_0(%arg0: i32) -> (i32, i32) {
    %c0_i32 = arith.constant 0 : i32
    %c0_i32_0 = arith.constant 0 : i32
    return %arg0, %c0_i32 : i32, i32
  }
  func.func @transform_1(%arg0: i32) -> (i32, i32) {
    %c0_i32 = arith.constant 0 : i32
    %c0_i32_0 = arith.constant 0 : i32
    %c0_i32_1 = arith.constant 0 : i32
    return %c0_i32, %c0_i32_0 : i32, i32
  }
  func.func @transform_2(%arg0: i32) -> (i32, i32) {
    %c0_i32 = arith.constant 0 : i32
    %c0_i32_0 = arith.constant 0 : i32
    %c0_i32_1 = arith.constant 0 : i32
    return %c0_i32, %c0_i32_0 : i32, i32
  }
  func.func @transform_3(%arg0: i32) -> (i32, i32) {
    %c0_i32 = arith.constant 0 : i32
    %c0_i32_0 = arith.constant 0 : i32
    %c0_i32_1 = arith.constant 0 : i32
    return %c0_i32, %c0_i32_0 : i32, i32
  }
  func.func @transform_4(%arg0: i32) -> (i32, i32) {
    %c0_i32 = arith.constant 0 : i32
    %c0_i32_0 = arith.constant 0 : i32
    %c0_i32_1 = arith.constant 0 : i32
    return %c0_i32, %c0_i32_0 : i32, i32
  }
  func.func @transform_5(%arg0: i32) -> (i32, i32) {
    %c0_i32 = arith.constant 0 : i32
    %c0_i32_0 = arith.constant 0 : i32
    %c0_i32_1 = arith.constant 0 : i32
    return %c0_i32, %c0_i32_0 : i32, i32
  }
  func.func @transform_6(%arg0: i32) -> (i32, i32) {
    %c0_i32 = arith.constant 0 : i32
    %c0_i32_0 = arith.constant 0 : i32
    %c0_i32_1 = arith.constant 0 : i32
    return %c0_i32, %c0_i32_0 : i32, i32
  }
  func.func @transform_7(%arg0: i32) -> (i32, i32) {
    %c0_i32 = arith.constant 0 : i32
    %c0_i32_0 = arith.constant 0 : i32
    %c0_i32_1 = arith.constant 0 : i32
    return %c0_i32, %c0_i32_0 : i32, i32
  }
  func.func @transform_8(%arg0: i32) -> (i32, i32) {
    %c0_i32 = arith.constant 0 : i32
    %c0_i32_0 = arith.constant 0 : i32
    %c0_i32_1 = arith.constant 0 : i32
    return %c0_i32, %c0_i32_0 : i32, i32
  }
  func.func @transform_9(%arg0: i32) -> (i32, i32) {
    %c0_i32 = arith.constant 0 : i32
    %c0_i32_0 = arith.constant 0 : i32
    return %arg0, %c0_i32 : i32, i32
  }
  func.func @transform_10(%arg0: i32) -> (i32, i32) {
    %c0_i32 = arith.constant 0 : i32
    %c0_i32_0 = arith.constant 0 : i32
    return %arg0, %c0_i32 : i32, i32
  }
}

</mosaic_0001>

<bundles_post_ra>
// kernel: _lambda_.1
= control target key start
LH: loop header
LB: loop body
LE: loop exit
PB: predicated region body
PF: predicated region fallthrough
CT: control target
= control target key end

     0   :  { %s1031_s0 = inlined_call_operand.vmem [shape: f32[64,32], index: 0, kind: input, shape index: {}]   ;;  %s1032_s1 = inlined_call_operand.hbm [shape: bf16[32,128], index: 1, kind: input, shape index: {}]   ;;  %s1033_s2 = inlined_call_operand.hbm [shape: f32[1,128], index: 2, kind: input, shape index: {}]   ;;  %s1034_s3 = inlined_call_operand.vmem [shape: bf16[128,64], index: 3, kind: input, shape index: {}]   ;;  %s1035_s4 = inlined_call_operand.vmem [shape: f32[1,64], index: 4, kind: input, shape index: {}]   ;;  %s1036_s5 = inlined_call_operand.vmem [shape: bf16[64,4], index: 5, kind: input, shape index: {}]   ;;  %s1037_s6 = inlined_call_operand.vmem [shape: f32[1,4], index: 6, kind: input, shape index: {}]   ;;  %s1038_s7 = inlined_call_operand.vmem [shape: bf16[64,1], index: 7, kind: input, shape index: {}]   ;;  %s1039_s8 = inlined_call_operand.<no memory space> [shape: f32[1,1], index: 8, kind: input, shape index: {}]   ;;  %s1040_s9 = inlined_call_operand.vmem [shape: f32[64,4], index: 9, kind: output, shape index: {0}]   ;;  %s1041_s10 = inlined_call_operand.vmem [shape: f32[64,1], index: 10, kind: output, shape index: {1}]  }
   0x1   :  { %v16_v0 = vstv %s1039_s8 }
   0x2   :  { %17 = vst [vmem:[#allocation2] sm:$0x1] %v16_v0 }
   0x3   :  { %18 = vsyncpa [#allocation4], 0 }
   0x4   :  { %19 = vsyncpa [#allocation6], 0  ;;  %s791_s15 = smov [#allocation3]   ;;  %s743_s19 = scalar_lea.hbm %s1032_s1, 256 }
   0x5   :  { %s27_s16 = sshll.u32 %s791_s15, 4  ;;  %p744_p0 = scmp.ne.s32.totalorder %s1032_s1, %s743_s19  ;;  %s28_s16 = int_to_ptr.vmem [resolvable:$true] %s27_s16 }
   0x6   :  { %p747_p1 = scmp.lt.u32.totalorder %s743_s19, %s1032_s1 }
   0x8   :  { %p749_p2 = pnand %p747_p1, %p744_p0 }
   0xa   :  { %752 = shalt.err (!%p749_p2)
}
   0xb   :  { %s753_s8 = scalar_lea.vmem %s28_s16, 256  ;;  %p758_p4 = scmp.lt.s32.totalorder %s28_s16, %s28_s16 }
   0xc   :  { %p754_p3 = scmp.ne.s32.totalorder %s28_s16, %s753_s8  ;;  %p759_p5 = scmp.lt.s32.totalorder %s753_s8, %s753_s8 }
   0xe   :  { %p760_p6 = por %p759_p5, %p758_p4 }
  0x10   :  { %p761_p7 = pnand %p760_p6, %p754_p3 }
  0x12   :  { %764 = shalt.err (!%p761_p7)
}
  0x13   :  { %s792_s24 = smov 64   ;;  %s793_s25 = smov 4  }
  0x14   :  { %33 = dma.hbm_to_vmem [thread:$0]  %s1032_s1, 256, %s28_s16, [#allocation4], %s792_s24, %s792_s24, %s793_s25  }
  0x15   :  { %s794_s28 = smov [#allocation5]   ;;  %s765_s12 = scalar_lea.hbm %s1033_s2, 16 }
  0x16   :  { %s40_s29 = sshll.u32 %s794_s28, 4  ;;  %p766_p8 = scmp.ne.s32.totalorder %s1033_s2, %s765_s12  ;;  %s41_s29 = int_to_ptr.vmem [resolvable:$true] %s40_s29 }
  0x17   :  { %p769_p9 = scmp.lt.u32.totalorder %s765_s12, %s1033_s2 }
  0x19   :  { %p771_p10 = pnand %p769_p9, %p766_p8 }
  0x1b   :  { %774 = shalt.err (!%p771_p10)
}
  0x1c   :  { %s775_s18 = scalar_lea.vmem %s41_s29, 16  ;;  %s779_s1 = scalar_lea.vmem %s41_s29, 32 }
  0x1d   :  { %p776_p11 = scmp.ne.s32.totalorder %s41_s29, %s775_s18  ;;  %p780_p12 = scmp.lt.s32.totalorder %s41_s29, %s41_s29 }
  0x1e   :  { %p781_p13 = scmp.lt.s32.totalorder %s779_s1, %s775_s18 }
  0x20   :  { %p782_p0 = por %p781_p13, %p780_p12 }
  0x22   :  { %p783_p1 = pnand %p782_p0, %p776_p11 }
  0x24   :  { %786 = shalt.err (!%p783_p1)
}
  0x25   :  { %43 = dma.hbm_to_vmem [thread:$0]  %s1033_s2, 16, %s41_s29, [#allocation6]  }
  0x26   :  { %787 = dma.done.wait [#allocation4], 256  }
  0x27   :  { %788 = vsyncadd [#allocation4], 4294967040 }
  0x28   :  { %789 = dma.done.wait [#allocation6], 16  }
  0x29   :  { %790 = vsyncadd [#allocation6], 4294967280  ;;  %v725_v1 = vld [vmem:[#allocation3] sm:$0xff]   ;;  %v726_v2 = vld [vmem:[#allocation3 + $0x8] sm:$0xff]   ;;  %vm98_vm0 = vcmask 261120   ;;  %vm375_vm1 = vcmask 523264  }
  0x2a   :  { %653 = vmatprep.subr.bf16.mxu0 %v725_v1  ;;  %v63_v3 = vld [vmem:[%s1031_s0] sm:$0xff]  ;;  %v64_v4 = vld [vmem:[%s1031_s0 + $0x8] sm:$0xff]  ;;  %v65_v6 = vld [vmem:[%s1031_s0 + $0x10] sm:$0xff]  ;;  %vm453_vm2 = vcmask 31744   ;;  %vm566_vm3 = vcmask 7168  }
  0x2b   :  { %654 = vmatpush3.bf16.msra.mxu0 %v725_v1  ;;  %v71_v5 = vpack.c.bf16 %v64_v4, %v63_v3  ;;  %v66_v7 = vld [vmem:[%s1031_s0 + $0x18] sm:$0xff]  ;;  %v67_v8 = vld [vmem:[%s1031_s0 + $0x20] sm:$0xff]  ;;  %v68_v9 = vld [vmem:[%s1031_s0 + $0x28] sm:$0xff] }
  0x2c   :  { %655 = vmatprep.subr.bf16.mxu0 %v726_v2  ;;  %v727_v10 = vld [vmem:[%s1034_s3] sm:$0xff]   ;;  %v72_v11 = vpack.c.bf16 %v66_v7, %v65_v6  ;;  %v728_v12 = vld [vmem:[%s1034_s3 + $0x8] sm:$0xff]   ;;  %v73_v13 = vpack.c.bf16 %v68_v9, %v67_v8  ;;  %v69_v14 = vld [vmem:[%s1031_s0 + $0x30] sm:$0xff] }
  0x2d   :  { %657 = vmatprep.mubr.msk.bf16.mxu0 %vm98_vm0, %v71_v5  ;;  %665 = vmatprep.subr.bf16.mxu1 %v727_v10  ;;  %v729_v15 = vld [vmem:[%s1034_s3 + $0x10] sm:$0xff]   ;;  %v70_v16 = vld [vmem:[%s1031_s0 + $0x38] sm:$0xff]  ;;  %v731_v19 = vld [vmem:[%s1034_s3 + $0x20] sm:$0xff]  }
  0x2e   :  { %666 = vmatpush3.bf16.msra.mxu1 %v727_v10  ;;  %v730_v17 = vld [vmem:[%s1034_s3 + $0x18] sm:$0xff]   ;;  %v74_v18 = vpack.c.bf16 %v70_v16, %v69_v14  ;;  %v732_v20 = vld [vmem:[%s1034_s3 + $0x28] sm:$0xff]   ;;  %v733_v21 = vld [vmem:[%s1034_s3 + $0x30] sm:$0xff]  }
  0x2f   :  { %656 = vmatpush3.bf16.msra.mxu0 %v726_v2  ;;  %667 = vmatprep.subr.bf16.mxu1 %v728_v12  ;;  %v734_v22 = vld [vmem:[%s1034_s3 + $0x38] sm:$0xff]   ;;  %v735_v23 = vld [vmem:[%s1036_s5] sm:$0xff]   ;;  %v736_v24 = vld [vmem:[%s1036_s5 + $0x8] sm:$0xff]  }
  0x30   :  { %689 = vmatprep.subr.bf16.mxu0 %v735_v23  ;;  %v585_v25 = vld [vmem:[#allocation5] ss:$0 sm:$0xff]  ;;  %v738_v55 = vld [vmem:[%s1036_s5 + $0x18] sm:$0xff]   ;;  %v739_v56 = vld [vmem:[%s1038_s7] sm:$0xff]  }
  0x31   :  { %v737_v54 = vld [vmem:[%s1036_s5 + $0x10] sm:$0xff]   ;;  %v592_v57 = vld [vmem:[%s1035_s4] ss:$0 sm:$0xff] }
  0x32   :  { %658 = vmatmul.mubr.msk.bf16.vlgmr.msra.gmra.mrb[0].mxu0 %vm98_vm0, %v72_v11  ;;  %668 = vmatpush3.bf16.msra.mxu1 %v728_v12  ;;  %v740_v11 = vld [vmem:[%s1038_s7 + $0x8] sm:$0xff]  }
  0x33   :  { %661 = vmatprep.mubr.msk.bf16.mxu0 %vm98_vm0, %v73_v13  ;;  %669 = vmatprep.subr.bf16.mxu1 %v729_v15 }
  0x34   :  { %690 = vmatpush3.bf16.msra.mxu0 %v735_v23 }
  0x35   :  { %691 = vmatprep.subr.bf16.mxu0 %v736_v24 }
  0x36   :  { %670 = vmatpush3.bf16.msra.mxu1 %v729_v15 }
  0x37   :  { %671 = vmatprep.subr.bf16.mxu1 %v730_v17 }
  0x38   :  { %692 = vmatpush3.bf16.msra.mxu0 %v736_v24  ;;  %v742_v24 = vld [vmem:[%s1038_s7 + $0x18] sm:$0xff]  }
  0x39   :  { %693 = vmatprep.subr.bf16.mxu0 %v737_v54 }
  0x3a   :  { %662 = vmatmul.mubr.msk.bf16.gmra.mrb[4].mxu0 %vm98_vm0, %v74_v18  ;;  %672 = vmatpush3.bf16.msra.mxu1 %v730_v17 }
  0x3b   :  { %673 = vmatprep.subr.bf16.mxu1 %v731_v19 }
  0x3c   :  { %694 = vmatpush3.bf16.msra.mxu0 %v737_v54 }
  0x3d   :  { %695 = vmatprep.subr.bf16.mxu0 %v738_v55 }
  0x3e   :  { %674 = vmatpush3.bf16.msra.mxu1 %v731_v19  ;;  %v741_v19 = vld [vmem:[%s1038_s7 + $0x10] sm:$0xff]  }
  0x3f   :  { %675 = vmatprep.subr.bf16.mxu1 %v732_v20 }
  0x40   :  { %696 = vmatpush3.bf16.msra.mxu0 %v738_v55 }
  0x41   :  { %705 = vmatprep.subr.bf16.mxu0 %v739_v56 }
  0x42   :  { %676 = vmatpush3.bf16.msra.mxu1 %v732_v20 }
  0x43   :  { %677 = vmatprep.subr.bf16.mxu1 %v733_v21 }
  0x46   :  { %678 = vmatpush3.bf16.msra.mxu1 %v733_v21 }
  0x47   :  { %679 = vmatprep.subr.bf16.mxu1 %v734_v22 }
  0x4a   :  { %680 = vmatpush3.bf16.msra.mxu1 %v734_v22 }
 0x105   :  { %v659_v26 = vpop.f32.mrb[0].mxu0 }
 0x106   :  { %v154_v27 = vadd.f32 %v659_v26, %v585_v25  ;;  %v145_v28 = vpop.f32.mrb[1].mxu0 }
 0x107   :  { %v146_v29 = vadd.f32 %v585_v25, %v145_v28  ;;  %v660_v30 = vpop.f32.mrb[2].mxu0 }
 0x108   :  { %v157_v31 = vadd.f32 %v660_v30, %v585_v25  ;;  %v148_v32 = vpop.f32.mrb[3].mxu0  ;;  %v178_v34 = vmax.f32 %v154_v27, 0.0 }
 0x109   :  { %v149_v33 = vadd.f32 %v585_v25, %v148_v32  ;;  %v176_v36 = vmax.f32 %v146_v29, 0.0 }
 0x10a   :  { %v179_v35 = vmax.f32 %v157_v31, 0.0 }
 0x10b   :  { %v177_v37 = vmax.f32 %v149_v33, 0.0 }
 0x10c   :  { %v185_v38 = vpack.c.bf16 %v179_v35, %v178_v34 }
 0x10d   :  { %v663_v39 = vpop.f32.mrb[4].mxu0  ;;  %v184_v40 = vpack.c.bf16 %v177_v37, %v176_v36 }
 0x10e   :  { %v170_v41 = vadd.f32 %v663_v39, %v585_v25  ;;  %v161_v42 = vpop.f32.mrb[5].mxu0 }
 0x10f   :  { %v162_v43 = vadd.f32 %v585_v25, %v161_v42  ;;  %v664_v44 = vpop.f32.mrb[6].mxu0  ;;  %681 = vmatprep.mubr.bf16.mxu1 %v184_v40  ;;  %v610_v42 = vld [vmem:[#allocation2] ss:$0 sm:$0xff] }
 0x110   :  { %v173_v45 = vadd.f32 %v664_v44, %v585_v25  ;;  %v164_v46 = vpop.f32.mrb[7].mxu0  ;;  %682 = vmatmul.mubr.bf16.vlgmr.msra.gmra.mrb[0].mxu1 %v185_v38  ;;  %v182_v48 = vmax.f32 %v170_v41, 0.0 }
 0x111   :  { %v165_v47 = vadd.f32 %v585_v25, %v164_v46  ;;  %v180_v50 = vmax.f32 %v162_v43, 0.0  ;;  %v601_v25 = vld [vmem:[%s1037_s6] ss:$0 sm:$0xff] }
 0x112   :  { %v183_v49 = vmax.f32 %v173_v45, 0.0 }
 0x113   :  { %v181_v51 = vmax.f32 %v165_v47, 0.0 }
 0x114   :  { %v187_v52 = vpack.c.bf16 %v183_v49, %v182_v48 }
 0x115   :  { %v186_v53 = vpack.c.bf16 %v181_v51, %v180_v50 }
 0x117   :  { %685 = vmatprep.mubr.bf16.mxu1 %v186_v53 }
 0x118   :  { %686 = vmatmul.mubr.bf16.gmra.mrb[4].mxu1 %v187_v52 }
 0x1e3   :  { %v683_v58 = vpop.f32.mrb[0].mxu1 }
 0x1e4   :  { %v302_v59 = vadd.f32 %v683_v58, %v592_v57  ;;  %v293_v60 = vpop.f32.mrb[1].mxu1 }
 0x1e5   :  { %v294_v61 = vadd.f32 %v592_v57, %v293_v60  ;;  %v684_v62 = vpop.f32.mrb[2].mxu1 }
 0x1e6   :  { %v305_v63 = vadd.f32 %v684_v62, %v592_v57  ;;  %v296_v0 = vpop.f32.mrb[3].mxu1  ;;  %v326_v2 = vmax.f32 %v302_v59, 0.0 }
 0x1e7   :  { %v297_v1 = vadd.f32 %v592_v57, %v296_v0  ;;  %v324_v4 = vmax.f32 %v294_v61, 0.0 }
 0x1e8   :  { %v327_v3 = vmax.f32 %v305_v63, 0.0 }
 0x1e9   :  { %v325_v5 = vmax.f32 %v297_v1, 0.0 }
 0x1ea   :  { %v333_v6 = vpack.c.bf16 %v327_v3, %v326_v2 }
 0x1eb   :  { %v332_v7 = vpack.c.bf16 %v325_v5, %v324_v4  ;;  %v687_v8 = vpop.f32.mrb[4].mxu1 }
 0x1ec   :  { %v318_v9 = vadd.f32 %v687_v8, %v592_v57  ;;  %v309_v10 = vpop.f32.mrb[5].mxu1 }
 0x1ed   :  { %v310_v12 = vadd.f32 %v592_v57, %v309_v10  ;;  %v688_v13 = vpop.f32.mrb[6].mxu1  ;;  %697 = vmatprep.mubr.msk.bf16.mxu0 %vm375_vm1, %v332_v7 }
 0x1ee   :  { %v321_v14 = vadd.f32 %v688_v13, %v592_v57  ;;  %v312_v15 = vpop.f32.mrb[7].mxu1  ;;  %698 = vmatmul.mubr.msk.bf16.vlgmr.msra.gmra.mrb[8].mxu0 %vm375_vm1, %v333_v6  ;;  %v330_v17 = vmax.f32 %v318_v9, 0.0 }
 0x1ef   :  { %v313_v16 = vadd.f32 %v592_v57, %v312_v15  ;;  %706 = vmatpush3.bf16.msra.mxu0 %v739_v56  ;;  %v328_v20 = vmax.f32 %v310_v12, 0.0 }
 0x1f0   :  { %v331_v18 = vmax.f32 %v321_v14, 0.0  ;;  %707 = vmatprep.subr.bf16.mxu0 %v740_v11 }
 0x1f1   :  { %v329_v21 = vmax.f32 %v313_v16, 0.0 }
 0x1f2   :  { %v335_v22 = vpack.c.bf16 %v331_v18, %v330_v17 }
 0x1f3   :  { %v334_v23 = vpack.c.bf16 %v329_v21, %v328_v20  ;;  %708 = vmatpush3.bf16.msra.mxu0 %v740_v11 }
 0x1f4   :  { %709 = vmatprep.subr.bf16.mxu0 %v741_v19 }
 0x1f5   :  { %701 = vmatprep.mubr.msk.bf16.mxu0 %vm375_vm1, %v334_v23 }
 0x1f6   :  { %702 = vmatmul.mubr.msk.bf16.gmra.mrb[12].mxu0 %vm375_vm1, %v335_v22 }
 0x1f7   :  { %710 = vmatpush3.bf16.msra.mxu0 %v741_v19  ;;  %713 = vmatprep.mubr.msk.bf16.mxu0 %vm375_vm1, %v332_v7 }
 0x1f8   :  { %711 = vmatprep.subr.bf16.mxu0 %v742_v24 }
 0x1fb   :  { %712 = vmatpush3.bf16.msra.mxu0 %v742_v24 }
 0x1fe   :  { %714 = vmatmul.mubr.msk.bf16.vlgmr.msra.gmra.mrb[16].mxu0 %vm375_vm1, %v333_v6 }
 0x1ff   :  { %717 = vmatprep.mubr.msk.bf16.mxu0 %vm375_vm1, %v334_v23 }
 0x206   :  { %718 = vmatmul.mubr.msk.bf16.gmra.mrb[20].mxu0 %vm375_vm1, %v335_v22 }
 0x2c1   :  { %v699_v26 = vpop.f32.mrb[8].mxu0 }
 0x2c2   :  { %v431_v27 = vadd.f32 %v699_v26, %v601_v25  ;;  %v422_v28 = vpop.f32.mrb[9].mxu0 }
 0x2c3   :  { %v423_v29 = vadd.f32 %v601_v25, %v422_v28  ;;  %v700_v30 = vpop.f32.mrb[10].mxu0 }
 0x2c4   :  { %456 = vst.msk [vmem:[%s1040_s9 + $0x10] sm:$0xff] %vm453_vm2, %v431_v27  ;;  %v434_v31 = vadd.f32 %v700_v30, %v601_v25  ;;  %v425_v32 = vpop.f32.mrb[11].mxu0 }
 0x2c5   :  { %454 = vst.msk [vmem:[%s1040_s9] sm:$0xff] %vm453_vm2, %v423_v29  ;;  %v426_v33 = vadd.f32 %v601_v25, %v425_v32 }
 0x2c6   :  { %457 = vst.msk [vmem:[%s1040_s9 + $0x18] sm:$0xff] %vm453_vm2, %v434_v31 }
 0x2c7   :  { %455 = vst.msk [vmem:[%s1040_s9 + $0x8] sm:$0xff] %vm453_vm2, %v426_v33 }
 0x2c9   :  { %v703_v34 = vpop.f32.mrb[12].mxu0 }
 0x2ca   :  { %v447_v35 = vadd.f32 %v703_v34, %v601_v25  ;;  %v438_v36 = vpop.f32.mrb[13].mxu0 }
 0x2cb   :  { %v439_v37 = vadd.f32 %v601_v25, %v438_v36  ;;  %v704_v38 = vpop.f32.mrb[14].mxu0 }
 0x2cc   :  { %460 = vst.msk [vmem:[%s1040_s9 + $0x30] sm:$0xff] %vm453_vm2, %v447_v35  ;;  %v450_v39 = vadd.f32 %v704_v38, %v601_v25  ;;  %v441_v40 = vpop.f32.mrb[15].mxu0 }
 0x2cd   :  { %458 = vst.msk [vmem:[%s1040_s9 + $0x20] sm:$0xff] %vm453_vm2, %v439_v37  ;;  %v442_v41 = vadd.f32 %v601_v25, %v441_v40 }
 0x2ce   :  { %461 = vst.msk [vmem:[%s1040_s9 + $0x38] sm:$0xff] %vm453_vm2, %v450_v39 }
 0x2cf   :  { %459 = vst.msk [vmem:[%s1040_s9 + $0x28] sm:$0xff] %vm453_vm2, %v442_v41 }
 0x2d1   :  { %v715_v43 = vpop.f32.mrb[16].mxu0 }
 0x2d2   :  { %v544_v44 = vadd.f32 %v715_v43, %v610_v42  ;;  %v535_v45 = vpop.f32.mrb[17].mxu0 }
 0x2d3   :  { %v536_v46 = vadd.f32 %v610_v42, %v535_v45  ;;  %v716_v47 = vpop.f32.mrb[18].mxu0 }
 0x2d4   :  { %569 = vst.msk [vmem:[%s1041_s10 + $0x10] sm:$0xff] %vm566_vm3, %v544_v44  ;;  %v547_v48 = vadd.f32 %v716_v47, %v610_v42  ;;  %v538_v49 = vpop.f32.mrb[19].mxu0 }
 0x2d5   :  { %567 = vst.msk [vmem:[%s1041_s10] sm:$0xff] %vm566_vm3, %v536_v46  ;;  %v539_v50 = vadd.f32 %v610_v42, %v538_v49 }
 0x2d6   :  { %570 = vst.msk [vmem:[%s1041_s10 + $0x18] sm:$0xff] %vm566_vm3, %v547_v48 }
 0x2d7   :  { %568 = vst.msk [vmem:[%s1041_s10 + $0x8] sm:$0xff] %vm566_vm3, %v539_v50 }
 0x2d9   :  { %v719_v51 = vpop.f32.mrb[20].mxu0 }
 0x2da   :  { %v560_v52 = vadd.f32 %v719_v51, %v610_v42  ;;  %v551_v53 = vpop.f32.mrb[21].mxu0 }
 0x2db   :  { %v552_v54 = vadd.f32 %v610_v42, %v551_v53  ;;  %v720_v55 = vpop.f32.mrb[22].mxu0 }
 0x2dc   :  { %573 = vst.msk [vmem:[%s1041_s10 + $0x30] sm:$0xff] %vm566_vm3, %v560_v52  ;;  %v563_v56 = vadd.f32 %v720_v55, %v610_v42  ;;  %v554_v57 = vpop.f32.mrb[23].mxu0 }
 0x2dd   :  { %571 = vst.msk [vmem:[%s1041_s10 + $0x20] sm:$0xff] %vm566_vm3, %v552_v54  ;;  %v555_v58 = vadd.f32 %v610_v42, %v554_v57 }
 0x2de   :  { %574 = vst.msk [vmem:[%s1041_s10 + $0x38] sm:$0xff] %vm566_vm3, %v563_v56 }
 0x2df   :  { %572 = vst.msk [vmem:[%s1041_s10 + $0x28] sm:$0xff] %vm566_vm3, %v555_v58 }
 0x2e0   :  { %583 = vsyncpa [#allocation4], 1 }
 0x2e1   :  { %584 = vsyncpa [#allocation6], 1 }

</bundles_post_ra>
